<compile_context>
chip_gen: v5e
topology: v5e:2x2
jax: 0.10.0
libtpu: 0.0.40
codegen_flags: <defaults>
</compile_context>

<pallas_src>
import jax
import jax.numpy as jnp
from jax.experimental import pallas as pl
from jax.experimental.pallas import tpu as pltpu


def clustering_kernel(x_ref, ct_ref, cb_ref, q_ref):
    # x_ref:  (bn, D)   input batch tile (original dtype)
    # ct_ref: (D, Kp)   (-2 * centroids)^T, zero-padded to Kp lanes
    # cb_ref: (1, Kp)   ||c_k||^2 + 1 (f32); ~3e38 for padded cluster lanes
    # q_ref:  (bn, Kp)  normalized soft assignments (x.dtype)
    x = x_ref[...]

    # Cross term (-2 x.c) on the MXU, accumulated in f32.
    cross = jnp.dot(x, ct_ref[...], preferred_element_type=jnp.float32)

    # ||x||^2 on the VPU in f32.
    x32 = x.astype(jnp.float32)
    x_norm = jnp.sum(x32 * x32, axis=1, keepdims=True)          # (bn, 1)

    # s = 1 + ||x - c||^2, clamped against cancellation; padded lanes ~3e38.
    s = jnp.maximum(x_norm + cb_ref[...] + cross, 1.0)          # (bn, Kp)

    # Student-t kernel (alpha=1) on the EUP reciprocal slot.
    # rcp(3e38) flushes to ~0, so padded lanes vanish without any mask.
    q = pl.reciprocal(s, approx=True)

    # Exact per-row normalization (only bn scalars) keeps sum_k q == 1 tight.
    inv_denom = 1.0 / jnp.sum(q, axis=1, keepdims=True)         # (bn, 1)
    q_ref[...] = (q * inv_denom).astype(q_ref.dtype)


def _round_up(v, m):
    return ((v + m - 1) // m) * m


def _choose_bn(n, block_n):
    bn_cap = min(block_n, _round_up(max(n, 1), 8))
    # v7x has 2 TensorCores: ensure the "parallel" batch axis has >=2
    # (ideally ~4) grid steps whenever the batch is big enough to split.
    if n > 8 and n <= 2 * block_n:
        bn_cap = min(bn_cap, _round_up(-(-n // 4), 8))
    bn_cap = max(8, (bn_cap // 8) * 8)
    # Prefer a tile that divides N exactly (skips the jnp.pad copy of x),
    # as long as it doesn't shrink the tile by more than ~2x.
    if n % 8 == 0:
        bn = bn_cap
        while bn >= 8 and n % bn != 0:
            bn -= 8
        if bn >= max(8, bn_cap // 2):
            return bn
    return bn_cap


def clustering_layer(x, centroids, *, block_n=512):
    N, D = x.shape
    K, Dc = centroids.shape
    assert D == Dc, "latent dims of x and centroids must match"

    # --- hoisted centroid preprocessing (done once, outside the grid) ------
    Kp = max(128, _round_up(K, 128))                 # lane-dense cluster dim
    c32 = centroids.astype(jnp.float32)
    # (-2 c)^T, zero-padded to Kp lanes, in the matmul dtype.
    c_t = jnp.zeros((D, Kp), x.dtype).at[:, :K].set(
        jnp.transpose(-2.0 * c32).astype(x.dtype))
    # ||c||^2 + 1 folded bias; padded lanes get a huge value so rcp() -> ~0.
    c_bias = jnp.full((1, Kp), 3e38, jnp.float32).at[0, :K].set(
        jnp.sum(c32 * c32, axis=1) + 1.0)

    # --- batch tiling -------------------------------------------------------
    bn = _choose_bn(N, block_n)
    Np = _round_up(N, bn)
    x_pad = x if Np == N else jnp.pad(x, ((0, Np - N), (0, 0)))

    # --- VMEM budget (v7x: 64 MiB physical; v5e default scoped is 16 MiB) ---
    itemsize = x.dtype.itemsize
    vmem_need = (2 * bn * D * itemsize          # double-buffered x tiles
                 + 2 * bn * Kp * itemsize       # double-buffered q tiles
                 + 2 * D * Kp * itemsize        # centroid constants (worst case)
                 + 2 * Kp * 4)
    try:
        vmem_cap = pltpu.get_tpu_info().vmem_capacity_bytes
    except Exception:
        vmem_cap = 64 * 1024 * 1024             # assume the smallest (v7x)
    vmem_limit = int(min(max(2 * vmem_need, 16 * 1024 * 1024), 0.75 * vmem_cap))
    # TODO(synk): for very large D*Kp, add a Kp-parallel axis and/or a D
    # "arbitrary" reduction axis so the (D, Kp) centroid block need not be
    # fully resident in VMEM.

    compiler_params = pltpu.CompilerParams(
        dimension_semantics=("parallel",),
        vmem_limit_bytes=vmem_limit,
    )

    def _run(const_pipeline_mode):
        return pl.pallas_call(
            clustering_kernel,
            out_shape=jax.ShapeDtypeStruct((Np, Kp), x.dtype),
            grid=(Np // bn,),
            in_specs=[
                pl.BlockSpec((bn, D), lambda i: (i, 0)),        # batch tile
                pl.BlockSpec((D, Kp), lambda i: (0, 0),         # resident c_t
                             pipeline_mode=const_pipeline_mode),
                pl.BlockSpec((1, Kp), lambda i: (0, 0),         # resident bias
                             pipeline_mode=const_pipeline_mode),
            ],
            out_specs=pl.BlockSpec((bn, Kp), lambda i: (i, 0)),
            compiler_params=compiler_params,
        )(x_pad, c_t, c_bias)

    try:
        # Constants are revisited every grid step (index (0,0)): single-buffer
        # them so the pipeline doesn't allocate a second, never-used copy.
        q_pad = _run(pl.Buffered(1))
    except Exception:
        q_pad = _run(None)   # fall back to default buffering if unsupported

    return q_pad[:N, :K]


def clustering_layer_ref(x, centroids):
    # Pure-JAX reference matching the PyTorch forward exactly.
    q = 1.0 / (1.0 + jnp.sum((x[:, None, :] - centroids[None, :, :]) ** 2, axis=2))
    q = q / jnp.sum(q, axis=1, keepdims=True)
    return q


if __name__ == "__main__":
    # Small shapes consistent with the module: batch N=8, n_clusters=4, n_z=32.
    N, n_clusters, n_z = 8, 4, 32

    key = jax.random.PRNGKey(0)
    kx, kc = jax.random.split(key)
    x = jax.random.normal(kx, (N, n_z), dtype=jnp.float32)
    # torch.Tensor(n_clusters, n_z) is uninitialized in the module; use a
    # fixed normal draw as the "parameter" here.
    centroids = jax.random.normal(kc, (n_clusters, n_z), dtype=jnp.float32)

    q = clustering_layer(x, centroids)
    q = jax.block_until_ready(q)

    q_ref = clustering_layer_ref(x, centroids)
    assert q.shape == (N, n_clusters)
    assert q.dtype == x.dtype
    # MXU-decomposed distances + EUP approximate reciprocal vs. the pure-VPU
    # reference: allow a small tolerance.
    assert jnp.allclose(q, q_ref, atol=2e-3, rtol=2e-3)
    # Rows of q sum to 1 (exact per-row reciprocal keeps this tight).
    assert jnp.allclose(jnp.sum(q, axis=1), jnp.ones((N,)), atol=1e-5)

    print("KERNEL_OK")
</pallas_src>

<mosaic_0001>
module attributes {stable_mosaic.version = 11 : i64} {
  func.func @clustering_kernel(%arg0: i32, %arg1: memref<8x32xf32, #tpu.memory_space<vmem>>, %arg2: memref<32x128xf32, #tpu.memory_space<vmem>>, %arg3: memref<1x128xf32, #tpu.memory_space<vmem>>, %arg4: memref<8x128xf32, #tpu.memory_space<vmem>>) attributes {dimension_semantics = [#tpu.dimension_semantics<parallel>], iteration_bounds = array<i64: 1>, scalar_prefetch = 0 : i64, scratch_operands = 0 : i64, tpu.core_type = #tpu.core_type<tc>, window_params = [{transform_indices = @transform_0, window_bounds = array<i64: 8, 32>}, {pipeline_mode = #tpu.pipeline_mode<synchronous>, transform_indices = @transform_1, window_bounds = array<i64: 32, 128>}, {pipeline_mode = #tpu.pipeline_mode<synchronous>, transform_indices = @transform_2, window_bounds = array<i64: 1, 128>}, {transform_indices = @transform_3, window_bounds = array<i64: 8, 128>}]} {
    %c0 = arith.constant 0 : index
    %c0_0 = arith.constant 0 : index
    %0 = vector.load %arg1[%c0, %c0_0] : memref<8x32xf32, #tpu.memory_space<vmem>>, vector<8x32xf32>
    %c0_1 = arith.constant 0 : index
    %c0_2 = arith.constant 0 : index
    %1 = vector.load %arg2[%c0_1, %c0_2] : memref<32x128xf32, #tpu.memory_space<vmem>>, vector<32x128xf32>
    %cst = arith.constant dense<0.000000e+00> : vector<8x128xf32>
    %2 = tpu.matmul %0, %1, %cst {dimension_numbers = #tpu.dot_dimension_numbers<[1], [0], [0], [1], [0, 0, 1, 1], [], []>} : vector<8x32xf32>, vector<32x128xf32>, vector<8x128xf32> -> vector<8x128xf32>
    %3 = arith.mulf %0, %0 : vector<8x32xf32>
    %cst_3 = arith.constant dense<0.000000e+00> : vector<8xf32>
    %4 = vector.multi_reduction <add>, %3, %cst_3 [1] : vector<8x32xf32> to vector<8xf32>
    %5 = vector.shape_cast %4 : vector<8xf32> to vector<8x1xf32>
    %c0_4 = arith.constant 0 : index
    %c0_5 = arith.constant 0 : index
    %6 = vector.load %arg3[%c0_4, %c0_5] : memref<1x128xf32, #tpu.memory_space<vmem>>, vector<1x128xf32>
    %7 = vector.broadcast %5 : vector<8x1xf32> to vector<8x128xf32>
    %8 = vector.broadcast %6 : vector<1x128xf32> to vector<8x128xf32>
    %9 = arith.addf %7, %8 : vector<8x128xf32>
    %10 = arith.addf %9, %2 : vector<8x128xf32>
    %cst_6 = arith.constant 1.000000e+00 : f32
    %11 = vector.broadcast %cst_6 : f32 to vector<8x128xf32>
    %12 = arith.maximumf %10, %11 : vector<8x128xf32>
    %13 = tpu.reciprocal %12 {approx = true} : vector<8x128xf32> -> vector<8x128xf32>
    %cst_7 = arith.constant dense<0.000000e+00> : vector<8xf32>
    %14 = vector.multi_reduction <add>, %13, %cst_7 [1] : vector<8x128xf32> to vector<8xf32>
    %15 = vector.shape_cast %14 : vector<8xf32> to vector<8x1xf32>
    %cst_8 = arith.constant 1.000000e+00 : f32
    %16 = vector.broadcast %cst_8 : f32 to vector<8x1xf32>
    %17 = arith.divf %16, %15 : vector<8x1xf32>
    %18 = vector.broadcast %17 : vector<8x1xf32> to vector<8x128xf32>
    %19 = arith.mulf %13, %18 : vector<8x128xf32>
    %c0_9 = arith.constant 0 : index
    %c0_10 = arith.constant 0 : index
    %20 = vector.load %arg4[%c0_9, %c0_10] : memref<8x128xf32, #tpu.memory_space<vmem>>, vector<8x128xf32>
    tpu.vector_store %arg4[%c0_9, %c0_10], %19 {strides = array<i32>} : memref<8x128xf32, #tpu.memory_space<vmem>>, vector<8x128xf32>,
    return
  }
  func.func @transform_0(%arg0: i32) -> (i32, i32) {
    %c0_i32 = arith.constant 0 : i32
    %c0_i32_0 = arith.constant 0 : i32
    return %arg0, %c0_i32 : i32, i32
  }
  func.func @transform_1(%arg0: i32) -> (i32, i32) {
    %c0_i32 = arith.constant 0 : i32
    %c0_i32_0 = arith.constant 0 : i32
    %c0_i32_1 = arith.constant 0 : i32
    return %c0_i32, %c0_i32_0 : i32, i32
  }
  func.func @transform_2(%arg0: i32) -> (i32, i32) {
    %c0_i32 = arith.constant 0 : i32
    %c0_i32_0 = arith.constant 0 : i32
    %c0_i32_1 = arith.constant 0 : i32
    return %c0_i32, %c0_i32_0 : i32, i32
  }
  func.func @transform_3(%arg0: i32) -> (i32, i32) {
    %c0_i32 = arith.constant 0 : i32
    %c0_i32_0 = arith.constant 0 : i32
    return %arg0, %c0_i32 : i32, i32
  }
}

module attributes {stable_mosaic.version = 11 : i64} {
  func.func @clustering_kernel(%arg0: i32, %arg1: memref<8x32xf32, #tpu.memory_space<vmem>>, %arg2: memref<32x128xf32, #tpu.memory_space<vmem>>, %arg3: memref<1x128xf32, #tpu.memory_space<vmem>>, %arg4: memref<8x128xf32, #tpu.memory_space<vmem>>) attributes {dimension_semantics = [#tpu.dimension_semantics<parallel>], iteration_bounds = array<i64: 1>, scalar_prefetch = 0 : i64, scratch_operands = 0 : i64, tpu.core_type = #tpu.core_type<tc>, window_params = [{transform_indices = @transform_0, window_bounds = array<i64: 8, 32>}, {pipeline_mode = #tpu.pipeline_mode<synchronous>, transform_indices = @transform_1, window_bounds = array<i64: 32, 128>}, {pipeline_mode = #tpu.pipeline_mode<synchronous>, transform_indices = @transform_2, window_bounds = array<i64: 1, 128>}, {transform_indices = @transform_3, window_bounds = array<i64: 8, 128>}]} {
    %c0 = arith.constant 0 : index
    %c0_0 = arith.constant 0 : index
    %0 = vector.load %arg1[%c0, %c0_0] : memref<8x32xf32, #tpu.memory_space<vmem>>, vector<8x32xf32>
    %c0_1 = arith.constant 0 : index
    %c0_2 = arith.constant 0 : index
    %1 = vector.load %arg2[%c0_1, %c0_2] : memref<32x128xf32, #tpu.memory_space<vmem>>, vector<32x128xf32>
    %cst = arith.constant dense<0.000000e+00> : vector<8x128xf32>
    %2 = tpu.matmul %0, %1, %cst {dimension_numbers = #tpu.dot_dimension_numbers<[1], [0], [0], [1], [0, 0, 1, 1], [], []>} : vector<8x32xf32>, vector<32x128xf32>, vector<8x128xf32> -> vector<8x128xf32>
    %3 = arith.mulf %0, %0 : vector<8x32xf32>
    %cst_3 = arith.constant dense<0.000000e+00> : vector<8xf32>
    %4 = vector.multi_reduction <add>, %3, %cst_3 [1] : vector<8x32xf32> to vector<8xf32>
    %5 = vector.shape_cast %4 : vector<8xf32> to vector<8x1xf32>
    %c0_4 = arith.constant 0 : index
    %c0_5 = arith.constant 0 : index
    %6 = vector.load %arg3[%c0_4, %c0_5] : memref<1x128xf32, #tpu.memory_space<vmem>>, vector<1x128xf32>
    %7 = vector.broadcast %5 : vector<8x1xf32> to vector<8x128xf32>
    %8 = vector.broadcast %6 : vector<1x128xf32> to vector<8x128xf32>
    %9 = arith.addf %7, %8 : vector<8x128xf32>
    %10 = arith.addf %9, %2 : vector<8x128xf32>
    %cst_6 = arith.constant 1.000000e+00 : f32
    %11 = vector.broadcast %cst_6 : f32 to vector<8x128xf32>
    %12 = arith.maximumf %10, %11 : vector<8x128xf32>
    %13 = tpu.reciprocal %12 {approx = true} : vector<8x128xf32> -> vector<8x128xf32>
    %cst_7 = arith.constant dense<0.000000e+00> : vector<8xf32>
    %14 = vector.multi_reduction <add>, %13, %cst_7 [1] : vector<8x128xf32> to vector<8xf32>
    %15 = vector.shape_cast %14 : vector<8xf32> to vector<8x1xf32>
    %cst_8 = arith.constant 1.000000e+00 : f32
    %16 = vector.broadcast %cst_8 : f32 to vector<8x1xf32>
    %17 = arith.divf %16, %15 : vector<8x1xf32>
    %18 = vector.broadcast %17 : vector<8x1xf32> to vector<8x128xf32>
    %19 = arith.mulf %13, %18 : vector<8x128xf32>
    %c0_9 = arith.constant 0 : index
    %c0_10 = arith.constant 0 : index
    %20 = vector.load %arg4[%c0_9, %c0_10] : memref<8x128xf32, #tpu.memory_space<vmem>>, vector<8x128xf32>
    tpu.vector_store %arg4[%c0_9, %c0_10], %19 {strides = array<i32>} : memref<8x128xf32, #tpu.memory_space<vmem>>, vector<8x128xf32>,
    return
  }
  func.func @transform_0(%arg0: i32) -> (i32, i32) {
    %c0_i32 = arith.constant 0 : i32
    %c0_i32_0 = arith.constant 0 : i32
    return %arg0, %c0_i32 : i32, i32
  }
  func.func @transform_1(%arg0: i32) -> (i32, i32) {
    %c0_i32 = arith.constant 0 : i32
    %c0_i32_0 = arith.constant 0 : i32
    %c0_i32_1 = arith.constant 0 : i32
    return %c0_i32, %c0_i32_0 : i32, i32
  }
  func.func @transform_2(%arg0: i32) -> (i32, i32) {
    %c0_i32 = arith.constant 0 : i32
    %c0_i32_0 = arith.constant 0 : i32
    %c0_i32_1 = arith.constant 0 : i32
    return %c0_i32, %c0_i32_0 : i32, i32
  }
  func.func @transform_3(%arg0: i32) -> (i32, i32) {
    %c0_i32 = arith.constant 0 : i32
    %c0_i32_0 = arith.constant 0 : i32
    return %arg0, %c0_i32 : i32, i32
  }
}

</mosaic_0001>

<bundles_post_ra>
// kernel: tpu_custom_call.1
= control target key start
LH: loop header
LB: loop body
LE: loop exit
PB: predicated region body
PF: predicated region fallthrough
CT: control target
= control target key end

     0   :  { %8 = vsyncpa [#allocation3], 0  ;;  %s249_s0 = inlined_call_operand.hbm [shape: f32[8,32], index: 0, kind: input, shape index: {}]   ;;  %s250_s1 = inlined_call_operand.hbm [shape: f32[32,128], index: 1, kind: input, shape index: {}]   ;;  %s251_s2 = inlined_call_operand.vmem [shape: f32[1,128], index: 2, kind: input, shape index: {}]   ;;  %s252_s3 = inlined_call_operand.hbm [shape: f32[8,128], index: 3, kind: output, shape index: {}]  }
   0x1   :  { %9 = vsyncpa [#allocation6], 0 }
   0x2   :  { %10 = vsyncpa [#allocation4], 0  ;;  %s16_s14 = sshll.u32 %s249_s0, 4  ;;  %s212_s15 = smov [#allocation2]   ;;  %s17_s14 = int_to_ptr.hbm [resolvable:$true] %s16_s14 }
   0x3   :  { %s18_s16 = sshll.u32 %s212_s15, 4  ;;  %s26_s19 = sshll.u32 %s250_s1, 4  ;;  %s19_s16 = int_to_ptr.vmem [resolvable:$true] %s18_s16  ;;  %s27_s19 = int_to_ptr.hbm [resolvable:$true] %s26_s19 }
   0x4   :  { %21 = dma.hbm_to_vmem [thread:$0]  %s17_s14, 128, %s19_s16, [#allocation3]  }
   0x5   :  { %s213_s20 = smov [#allocation5]   ;;  %s214_s22 = smov 128  }
   0x6   :  { %s28_s21 = sshll.u32 %s213_s20, 4  ;;  %s215_s23 = smov 8   ;;  %s29_s21 = int_to_ptr.vmem [resolvable:$true] %s28_s21 }
   0x7   :  { %34 = dma.hbm_to_vmem [thread:$0]  %s27_s19, 512, %s29_s21, [#allocation6], %s214_s22, %s214_s22, %s215_s23  }
   0x8   :  { %206 = dma.done.wait [#allocation3], 128  }
   0x9   :  { %207 = vsyncadd [#allocation3], 4294967168 }
   0xa   :  { %208 = dma.done.wait [#allocation6], 512  }
   0xb   :  { %209 = vsyncadd [#allocation6], 4294966784  ;;  %v49_v0 = vld [vmem:[#allocation5 + $0x18] sm:$0xff]  ;;  %v48_v1 = vld [vmem:[#allocation5 + $0x10] sm:$0xff]  ;;  %vm50_vm0 = vcmask 261120   ;;  %s112_s27 = sshll.u32 %s252_s3, 4  ;;  %s113_s27 = int_to_ptr.hbm [resolvable:$true] %s112_s27 }
   0xc   :  { %66 = vmatpush.msra.mxu0 %v49_v0  ;;  %v45_v2 = vld [vmem:[#allocation2] sm:$0xff]  ;;  %v47_v3 = vld [vmem:[#allocation5 + $0x8] sm:$0xff]  ;;  %v46_v5 = vld [vmem:[#allocation5] sm:$0xff] }
   0xd   :  { %v74_v4 = vmul.f32 %v45_v2, %v45_v2  ;;  %v129_v7 = vld [vmem:[%s251_s2] ss:$0 sm:$0xff]  ;;  %s216_s2 = smov [#allocation7]  }
   0xe   :  { %67 = vmatpush.msra.mxu0 %v48_v1  ;;  %s110_s24 = sshll.u32 %s216_s2, 4  ;;  %s111_s24 = int_to_ptr.vmem [resolvable:$true] %s110_s24 }
   0xf   :  { %v75_v6 = vsel %vm50_vm0, %v74_v4, 0.0 }
  0x10   :  { %68 = vmatpush.msra.mxu0 %v47_v3  ;;  %76 = vadd.xlane.f32.xlu0 %v75_v6 }
  0x12   :  { %69 = vmatpush.msra.mxu0 %v46_v5 }
  0x13   :  { %123 = vmatmul.msk.f32.vlgmr.msra.gmra.mxu0 %vm50_vm0, %v45_v2 }
  0x83   :  { %v77_v8 = vpop.xlane.xlu0 %76 }
  0x84   :  { %v82_v9 = vadd.f32 %v129_v7, %v77_v8 }
  0x90   :  { %v71_v10 = vpop.f32.mrf.mxu0 }
  0x91   :  { %v83_v11 = vadd.f32 %v82_v9, %v71_v10 }
  0x93   :  { %v84_v12 = vmax.f32 %v83_v11, 1.0 }
  0x95   :  { %130 = vrcp.f32 %v84_v12 }
  0x9b   :  { %v131_v13 = vpop.eup %130 }
  0x9c   :  { %86 = vadd.xlane.f32.xlu0 %v131_v13 }
 0x10f   :  { %v87_v14 = vpop.xlane.xlu0 %86 }
 0x110   :  { %132 = vrcp.f32 %v87_v14  ;;  %v99_v18 = vand.u32 2147483648, %v87_v14  ;;  %v97_v20 = vand.u32 2147483647, %v87_v14  ;;  %vm93_vm2 = vweird.f32 %v87_v14 }
 0x112   :  { %v100_v22 = vor.u32 1.1754944e-38, %v99_v18  ;;  %vm98_vm4 = vcmp.eq.f32.partialorder %v97_v20, 8.507059e+37 }
 0x116   :  { %v133_v15 = vpop.eup %132 }
 0x117   :  { %v89_v16 = vmul.f32 %v133_v15, %v87_v14  ;;  %vm94_vm1 = vweird.f32 %v133_v15 }
 0x118   :  { %vm95_vm3 = vmor %vm93_vm2, %vm94_vm1 }
 0x119   :  { %v90_v17 = vsub.f32 1.0, %v89_v16 }
 0x11b   :  { %v91_v19 = vmul.f32 %v133_v15, %v90_v17 }
 0x11d   :  { %v92_v21 = vadd.f32 %v133_v15, %v91_v19 }
 0x11f   :  { %v96_v23 = vsel %vm95_vm3, %v133_v15, %v92_v21 }
 0x120   :  { %v101_v24 = vsel %vm98_vm4, %v100_v22, %v96_v23 }
 0x121   :  { %v103_v25 = vmul.f32 %v131_v13, %v101_v24 }
 0x123   :  { %104 = vst [vmem:[#allocation7] sm:$0xff] %v103_v25 }
 0x124   :  { %115 = dma.vmem_to_hbm [thread:$0]  %s111_s24, 128, %s113_s27, [#allocation4]  }
 0x125   :  { %210 = dma.done.wait [#allocation4], 128  }
 0x126   :  { %211 = vsyncadd [#allocation4], 4294967168 }
 0x127   :  { %120 = vsyncpa [#allocation3], 1 }
 0x128   :  { %121 = vsyncpa [#allocation6], 1 }
 0x129   :  { %122 = vsyncpa [#allocation4], 1 }

// kernel: tpu_custom_call.1
= control target key start
LH: loop header
LB: loop body
LE: loop exit
PB: predicated region body
PF: predicated region fallthrough
CT: control target
= control target key end

     0   :  { %8 = vsyncpa [#allocation3], 0  ;;  %s249_s0 = inlined_call_operand.hbm [shape: f32[8,32], index: 0, kind: input, shape index: {}]   ;;  %s250_s1 = inlined_call_operand.hbm [shape: f32[32,128], index: 1, kind: input, shape index: {}]   ;;  %s251_s2 = inlined_call_operand.vmem [shape: f32[1,128], index: 2, kind: input, shape index: {}]   ;;  %s252_s3 = inlined_call_operand.hbm [shape: f32[8,128], index: 3, kind: output, shape index: {}]  }
   0x1   :  { %9 = vsyncpa [#allocation6], 0 }
   0x2   :  { %10 = vsyncpa [#allocation4], 0  ;;  %s16_s14 = sshll.u32 %s249_s0, 4  ;;  %s212_s15 = smov [#allocation2]   ;;  %s17_s14 = int_to_ptr.hbm [resolvable:$true] %s16_s14 }
   0x3   :  { %s18_s16 = sshll.u32 %s212_s15, 4  ;;  %s26_s19 = sshll.u32 %s250_s1, 4  ;;  %s19_s16 = int_to_ptr.vmem [resolvable:$true] %s18_s16  ;;  %s27_s19 = int_to_ptr.hbm [resolvable:$true] %s26_s19 }
   0x4   :  { %21 = dma.hbm_to_vmem [thread:$0]  %s17_s14, 128, %s19_s16, [#allocation3]  }
   0x5   :  { %s213_s20 = smov [#allocation5]   ;;  %s214_s22 = smov 128  }
   0x6   :  { %s28_s21 = sshll.u32 %s213_s20, 4  ;;  %s215_s23 = smov 8   ;;  %s29_s21 = int_to_ptr.vmem [resolvable:$true] %s28_s21 }
   0x7   :  { %34 = dma.hbm_to_vmem [thread:$0]  %s27_s19, 512, %s29_s21, [#allocation6], %s214_s22, %s214_s22, %s215_s23  }
   0x8   :  { %206 = dma.done.wait [#allocation3], 128  }
   0x9   :  { %207 = vsyncadd [#allocation3], 4294967168 }
   0xa   :  { %208 = dma.done.wait [#allocation6], 512  }
   0xb   :  { %209 = vsyncadd [#allocation6], 4294966784  ;;  %v49_v0 = vld [vmem:[#allocation5 + $0x18] sm:$0xff]  ;;  %v48_v1 = vld [vmem:[#allocation5 + $0x10] sm:$0xff]  ;;  %vm50_vm0 = vcmask 261120   ;;  %s112_s27 = sshll.u32 %s252_s3, 4  ;;  %s113_s27 = int_to_ptr.hbm [resolvable:$true] %s112_s27 }
   0xc   :  { %66 = vmatpush.msra.mxu0 %v49_v0  ;;  %v45_v2 = vld [vmem:[#allocation2] sm:$0xff]  ;;  %v47_v3 = vld [vmem:[#allocation5 + $0x8] sm:$0xff]  ;;  %v46_v5 = vld [vmem:[#allocation5] sm:$0xff] }
   0xd   :  { %v74_v4 = vmul.f32 %v45_v2, %v45_v2  ;;  %v129_v7 = vld [vmem:[%s251_s2] ss:$0 sm:$0xff]  ;;  %s216_s2 = smov [#allocation7]  }
   0xe   :  { %67 = vmatpush.msra.mxu0 %v48_v1  ;;  %s110_s24 = sshll.u32 %s216_s2, 4  ;;  %s111_s24 = int_to_ptr.vmem [resolvable:$true] %s110_s24 }
   0xf   :  { %v75_v6 = vsel %vm50_vm0, %v74_v4, 0.0 }
  0x10   :  { %68 = vmatpush.msra.mxu0 %v47_v3  ;;  %76 = vadd.xlane.f32.xlu0 %v75_v6 }
  0x12   :  { %69 = vmatpush.msra.mxu0 %v46_v5 }
  0x13   :  { %123 = vmatmul.msk.f32.vlgmr.msra.gmra.mxu0 %vm50_vm0, %v45_v2 }
  0x83   :  { %v77_v8 = vpop.xlane.xlu0 %76 }
  0x84   :  { %v82_v9 = vadd.f32 %v129_v7, %v77_v8 }
  0x90   :  { %v71_v10 = vpop.f32.mrf.mxu0 }
  0x91   :  { %v83_v11 = vadd.f32 %v82_v9, %v71_v10 }
  0x93   :  { %v84_v12 = vmax.f32 %v83_v11, 1.0 }
  0x95   :  { %130 = vrcp.f32 %v84_v12 }
  0x9b   :  { %v131_v13 = vpop.eup %130 }
  0x9c   :  { %86 = vadd.xlane.f32.xlu0 %v131_v13 }
 0x10f   :  { %v87_v14 = vpop.xlane.xlu0 %86 }
 0x110   :  { %132 = vrcp.f32 %v87_v14  ;;  %v99_v18 = vand.u32 2147483648, %v87_v14  ;;  %v97_v20 = vand.u32 2147483647, %v87_v14  ;;  %vm93_vm2 = vweird.f32 %v87_v14 }
 0x112   :  { %v100_v22 = vor.u32 1.1754944e-38, %v99_v18  ;;  %vm98_vm4 = vcmp.eq.f32.partialorder %v97_v20, 8.507059e+37 }
 0x116   :  { %v133_v15 = vpop.eup %132 }
 0x117   :  { %v89_v16 = vmul.f32 %v133_v15, %v87_v14  ;;  %vm94_vm1 = vweird.f32 %v133_v15 }
 0x118   :  { %vm95_vm3 = vmor %vm93_vm2, %vm94_vm1 }
 0x119   :  { %v90_v17 = vsub.f32 1.0, %v89_v16 }
 0x11b   :  { %v91_v19 = vmul.f32 %v133_v15, %v90_v17 }
 0x11d   :  { %v92_v21 = vadd.f32 %v133_v15, %v91_v19 }
 0x11f   :  { %v96_v23 = vsel %vm95_vm3, %v133_v15, %v92_v21 }
 0x120   :  { %v101_v24 = vsel %vm98_vm4, %v100_v22, %v96_v23 }
 0x121   :  { %v103_v25 = vmul.f32 %v131_v13, %v101_v24 }
 0x123   :  { %104 = vst [vmem:[#allocation7] sm:$0xff] %v103_v25 }
 0x124   :  { %115 = dma.vmem_to_hbm [thread:$0]  %s111_s24, 128, %s113_s27, [#allocation4]  }
 0x125   :  { %210 = dma.done.wait [#allocation4], 128  }
 0x126   :  { %211 = vsyncadd [#allocation4], 4294967168 }
 0x127   :  { %120 = vsyncpa [#allocation3], 1 }
 0x128   :  { %121 = vsyncpa [#allocation6], 1 }
 0x129   :  { %122 = vsyncpa [#allocation4], 1 }

</bundles_post_ra>
